<compile_context>
chip_gen: v7x
topology: tpu7x:2x2x1
jax: 0.10.0
libtpu: 0.0.40
codegen_flags: <defaults>
</compile_context>

<pallas_src>
import functools
import math

import jax
import jax.numpy as jnp
from jax.experimental import pallas as pl
from jax.experimental.pallas import tpu as pltpu


_VMEM_LIMIT = 48 * 1024 * 1024        # <= v7x's 64 MiB physical; raise vs v5e default
_RESIDENT_P_LIMIT = 12 * 1024 * 1024  # keep (double-buffered) resident p well in budget


def _round_up(x, m):
    return (x + m - 1) // m * m


def _choose_tiles(n, tm_target, tk_target):
    """Pick (n_pad, tm, tk): tiles multiples of 128, n_pad a multiple of both."""
    n128 = _round_up(n, 128)
    tm = min(_round_up(tm_target, 128), n128)
    tk = min(_round_up(tk_target, 128), n128)
    if tk % tm:
        tk = max(tm, (tk // tm) * tm)       # make tk a multiple of tm
    n_pad = _round_up(n, max(tm, tk))       # guarantees n_pad % tm == n_pad % tk == 0
    # NOTE (v7x): if n_pad // tm collapses to 1-2 row tiles on a big graph,
    # prefer growing tk instead of tm so both TensorCores get balanced work.
    return n_pad, tm, tk


# --------------------------------------------------------------------------
# Kernel 1: row-tiled feature projection   p = x @ W_t      (bias deferred)
# --------------------------------------------------------------------------
def _proj_kernel(x_ref, w_ref, p_ref):
    p_ref[...] = jnp.dot(
        x_ref[...], w_ref[...], preferred_element_type=jnp.float32
    ).astype(p_ref.dtype)


def _project(x, w_t, *, tm, out_dtype):
    n, f_in = x.shape
    f_out = w_t.shape[1]
    return pl.pallas_call(
        _proj_kernel,
        out_shape=jax.ShapeDtypeStruct((n, f_out), out_dtype),
        grid_spec=pltpu.PrefetchScalarGridSpec(
            num_scalar_prefetch=0,
            grid=(n // tm,),
            in_specs=[
                pl.BlockSpec((tm, f_in), lambda i: (i, 0)),
                pl.BlockSpec((f_in, f_out), lambda i: (0, 0)),
            ],
            out_specs=pl.BlockSpec((tm, f_out), lambda i: (i, 0)),
        ),
        compiler_params=pltpu.CompilerParams(
            dimension_semantics=("parallel",),
            vmem_limit_bytes=_VMEM_LIMIT,
        ),
        cost_estimate=pl.CostEstimate(
            flops=2 * n * f_in * f_out,
            transcendentals=0,
            bytes_accessed=int(
                x.size * x.dtype.itemsize
                + w_t.size * w_t.dtype.itemsize
                + n * f_out * 2
            ),
        ),
    )(x, w_t)


def _p_block_spec(n, f, tk, itemsize):
    """Resident p (constant index map) if it fits comfortably, else k-tiled."""
    if n * f * itemsize <= _RESIDENT_P_LIMIT:
        return pl.BlockSpec((n, f), lambda i, k: (0, 0)), True
    return pl.BlockSpec((tk, f), lambda i, k: (k, 0)), False


def _p_slice(p_ref, k, tk, p_resident):
    if p_resident:
        return p_ref[pl.ds(pl.multiple_of(k * tk, tk), tk), :]
    return p_ref[...]


# --------------------------------------------------------------------------
# Kernel 2: aggregation + bias, fused with the next layer's projection
#           out = (adj @ p + b) @ W_t
# --------------------------------------------------------------------------
def _agg_bias_proj_kernel(adj_ref, p_ref, b_ref, w_ref, out_ref, acc_ref,
                          *, tk, p_resident):
    k = pl.program_id(1)

    @pl.when(k == 0)
    def _():
        acc_ref[...] = jnp.zeros_like(acc_ref)

    acc_ref[...] += jnp.dot(
        adj_ref[...], _p_slice(p_ref, k, tk, p_resident),
        preferred_element_type=jnp.float32,
    )

    @pl.when(k == pl.num_programs(1) - 1)
    def _():
        # bias in f32, then cast to bf16 so the fused projection is a native
        # single-pass bf16 MXU matmul (w_ref is bf16).
        h = (acc_ref[...] + b_ref[...]).astype(w_ref.dtype)
        out_ref[...] = jnp.dot(
            h, w_ref[...], preferred_element_type=jnp.float32
        ).astype(out_ref.dtype)


def _aggregate_bias_project(adj, p, b, w_t, *, tm, tk, out_dtype):
    n = adj.shape[0]
    f = p.shape[1]
    f_out = w_t.shape[1]
    p_spec, p_resident = _p_block_spec(n, f, tk, p.dtype.itemsize)
    kernel = functools.partial(_agg_bias_proj_kernel, tk=tk, p_resident=p_resident)
    return pl.pallas_call(
        kernel,
        out_shape=jax.ShapeDtypeStruct((n, f_out), out_dtype),
        grid_spec=pltpu.PrefetchScalarGridSpec(
            num_scalar_prefetch=0,
            grid=(n // tm, n // tk),
            in_specs=[
                pl.BlockSpec((tm, tk), lambda i, k: (i, k)),
                p_spec,
                pl.BlockSpec((1, f), lambda i, k: (0, 0)),
                pl.BlockSpec((f, f_out), lambda i, k: (0, 0)),
            ],
            out_specs=pl.BlockSpec((tm, f_out), lambda i, k: (i, 0)),
            scratch_shapes=[pltpu.VMEM((tm, f), jnp.float32)],
        ),
        compiler_params=pltpu.CompilerParams(
            dimension_semantics=("parallel", "arbitrary"),
            vmem_limit_bytes=_VMEM_LIMIT,
        ),
        cost_estimate=pl.CostEstimate(
            flops=2 * n * n * f + 2 * n * f * f_out,
            transcendentals=0,
            bytes_accessed=int(
                adj.size * adj.dtype.itemsize
                + p.size * p.dtype.itemsize
                + w_t.size * w_t.dtype.itemsize
                + n * f_out * 2
            ),
        ),
    )(adj, p, b, w_t)


# --------------------------------------------------------------------------
# Kernel 3: aggregation + bias + masked log_softmax
#           out = log_softmax(adj @ p + b)   over the first n_valid_cols
# --------------------------------------------------------------------------
def _agg_bias_logsoftmax_kernel(adj_ref, p_ref, b_ref, out_ref, acc_ref,
                                *, tk, p_resident, n_valid_cols):
    k = pl.program_id(1)

    @pl.when(k == 0)
    def _():
        acc_ref[...] = jnp.zeros_like(acc_ref)

    acc_ref[...] += jnp.dot(
        adj_ref[...], _p_slice(p_ref, k, tk, p_resident),
        preferred_element_type=jnp.float32,
    )

    @pl.when(k == pl.num_programs(1) - 1)
    def _():
        h = acc_ref[...] + b_ref[...]
        padded = n_valid_cols < h.shape[1]
        if padded:
            col = jax.lax.broadcasted_iota(jnp.int32, h.shape, 1)
            valid = col < n_valid_cols
            h = jnp.where(valid, h, -1e30)          # mask padded class columns
        m = jnp.max(h, axis=1, keepdims=True)
        s = h - m
        e = jnp.exp(s)
        if padded:
            e = jnp.where(valid, e, 0.0)
        lse = jnp.log(jnp.sum(e, axis=1, keepdims=True))
        out_ref[...] = (s - lse).astype(out_ref.dtype)


def _aggregate_bias_logsoftmax(adj, p, b, *, tm, tk, n_valid_cols):
    n = adj.shape[0]
    f = p.shape[1]
    p_spec, p_resident = _p_block_spec(n, f, tk, p.dtype.itemsize)
    kernel = functools.partial(_agg_bias_logsoftmax_kernel, tk=tk,
                               p_resident=p_resident, n_valid_cols=n_valid_cols)
    return pl.pallas_call(
        kernel,
        out_shape=jax.ShapeDtypeStruct((n, f), jnp.float32),
        grid_spec=pltpu.PrefetchScalarGridSpec(
            num_scalar_prefetch=0,
            grid=(n // tm, n // tk),
            in_specs=[
                pl.BlockSpec((tm, tk), lambda i, k: (i, k)),
                p_spec,
                pl.BlockSpec((1, f), lambda i, k: (0, 0)),
            ],
            out_specs=pl.BlockSpec((tm, f), lambda i, k: (i, 0)),
            scratch_shapes=[pltpu.VMEM((tm, f), jnp.float32)],
        ),
        compiler_params=pltpu.CompilerParams(
            dimension_semantics=("parallel", "arbitrary"),
            vmem_limit_bytes=_VMEM_LIMIT,
        ),
        cost_estimate=pl.CostEstimate(
            flops=2 * n * n * f,
            transcendentals=n * f,
            bytes_accessed=int(
                adj.size * adj.dtype.itemsize
                + p.size * p.dtype.itemsize
                + n * f * 4
            ),
        ),
    )(adj, p, b)


# --------------------------------------------------------------------------
# Wrapper: pad/cast static operands ONCE, return a jitted forward over x.
# --------------------------------------------------------------------------
def build_gcn_forward(adj, w1_t, b1, w2_t, b2, *, tm_target=512, tk_target=2048):
    n = adj.shape[0]
    in_dim, hid2 = w1_t.shape
    out_dim = w2_t.shape[1]

    n_pad, tm, tk = _choose_tiles(n, tm_target, tk_target)
    f_in_pad = _round_up(in_dim, 128)
    h_pad = _round_up(hid2, 128)
    o_pad = _round_up(out_dim, 128)

    # One-time pad + cast of static operands (adjacency + parameters): bf16 for
    # MXU operands, f32 for biases (added to the f32 accumulator).
    adj_p = jnp.zeros((n_pad, n_pad), jnp.bfloat16).at[:n, :n].set(
        adj.astype(jnp.bfloat16))
    w1_p = jnp.zeros((f_in_pad, h_pad), jnp.bfloat16).at[:in_dim, :hid2].set(
        w1_t.astype(jnp.bfloat16))
    b1_p = jnp.zeros((1, h_pad), jnp.float32).at[:, :hid2].set(
        jnp.reshape(b1, (1, hid2)).astype(jnp.float32))
    w2_p = jnp.zeros((h_pad, o_pad), jnp.bfloat16).at[:hid2, :out_dim].set(
        w2_t.astype(jnp.bfloat16))
    b2_p = jnp.zeros((1, o_pad), jnp.float32).at[:, :out_dim].set(
        jnp.reshape(b2, (1, out_dim)).astype(jnp.float32))

    def forward(x):
        # TODO(synk): training-mode dropout not implemented (inference path).
        x_p = jnp.zeros((n_pad, f_in_pad), jnp.bfloat16).at[:n, :in_dim].set(
            x.astype(jnp.bfloat16))

        # Layer 1 projection: p1 = x @ W1^T  (bias deferred so that
        # adj @ (x @ W1^T) + b1 == (adj @ x) @ W1^T + b1 exactly).
        p1 = _project(x_p, w1_p, tm=tm, out_dtype=jnp.bfloat16)

        # Layer 1 aggregation + bias, fused with layer 2 projection:
        #   p2 = (adj @ p1 + b1) @ W2^T
        p2 = _aggregate_bias_project(adj_p, p1, b1_p, w2_p,
                                     tm=tm, tk=tk, out_dtype=jnp.bfloat16)

        # Layer 2 aggregation + bias + log_softmax over valid class columns:
        #   out = log_softmax(adj @ p2 + b2)
        out_p = _aggregate_bias_logsoftmax(adj_p, p2, b2_p,
                                           tm=tm, tk=tk, n_valid_cols=out_dim)
        return out_p[:n, :out_dim]

    return jax.jit(forward)


# --------------------------------------------------------------------------
# Reference + test
# --------------------------------------------------------------------------
def xavier_normal(key, shape):
    # shape = (fan_out, fan_in) like torch Linear.weight
    fan_out, fan_in = shape
    std = math.sqrt(2.0 / (fan_in + fan_out))
    return std * jax.random.normal(key, shape, dtype=jnp.float32)


def reference_forward(adj, x, w1_t, b1, w2_t, b2):
    h1 = adj @ x
    h1 = h1 @ w1_t + b1
    h2 = adj @ h1
    h2 = h2 @ w2_t + b2
    return jax.nn.log_softmax(h2, axis=1)


def _run_case(key, n, in_dim, hid_dim, out_dim, tm_target, tk_target):
    k_x, k_adj, k_w1, k_b1, k_w2, k_b2 = jax.random.split(key, 6)

    x = jax.random.normal(k_x, (n, in_dim), dtype=jnp.float32)
    a = jax.random.uniform(k_adj, (n, n), dtype=jnp.float32)
    adj = a / jnp.sum(a, axis=1, keepdims=True)

    w1 = xavier_normal(k_w1, (2 * hid_dim, in_dim))
    b1 = 0.01 * jax.random.normal(k_b1, (1, 2 * hid_dim), dtype=jnp.float32)
    w2 = xavier_normal(k_w2, (out_dim, 2 * hid_dim))
    b2 = 0.01 * jax.random.normal(k_b2, (1, out_dim), dtype=jnp.float32)

    w1_t = w1.T
    w2_t = w2.T

    fwd = build_gcn_forward(adj, w1_t, b1, w2_t, b2,
                            tm_target=tm_target, tk_target=tk_target)
    out = jax.block_until_ready(fwd(x))

    ref = reference_forward(adj, x, w1_t, b1, w2_t, b2)
    assert out.shape == (n, out_dim)
    # bf16 adj / activations / weights in the MXU matmuls -> relaxed tolerance.
    assert jnp.allclose(out, ref, atol=2e-2, rtol=2e-2), (
        "mismatch vs JAX reference: max abs diff = "
        f"{float(jnp.max(jnp.abs(out - ref)))}"
    )


if __name__ == "__main__":
    key = jax.random.PRNGKey(0)
    k1, k2 = jax.random.split(key)

    # Case 1: tiny graph, default (large) tile targets -> single-tile path.
    _run_case(k1, n=8, in_dim=16, hid_dim=32, out_dim=8,
              tm_target=512, tk_target=2048)

    # Case 2: multi-tile path: N > tk exercises the k-reduction accumulator,
    # pl.when init/finalize, resident-p dynamic slicing, and the padded-column
    # log_softmax masking (out_dim < 128).
    _run_case(k2, n=300, in_dim=64, hid_dim=16, out_dim=7,
              tm_target=128, tk_target=128)

    print("KERNEL_OK")
</pallas_src>

<mosaic_0001>
module attributes {stable_mosaic.version = 11 : i64} {
  func.func @_agg_bias_logsoftmax_kernel(%arg0: i32, %arg1: i32, %arg2: memref<128x128xbf16, #tpu.memory_space<vmem>>, %arg3: memref<128x128xbf16, #tpu.memory_space<vmem>>, %arg4: memref<1x128xf32, #tpu.memory_space<vmem>>, %arg5: memref<128x128xf32, #tpu.memory_space<vmem>>, %arg6: memref<128x128xf32, #tpu.memory_space<vmem>>) attributes {dimension_semantics = [#tpu.dimension_semantics<parallel>, #tpu.dimension_semantics<arbitrary>], iteration_bounds = array<i64: 1, 1>, scalar_prefetch = 0 : i64, scratch_operands = 1 : i64, tpu.core_type = #tpu.core_type<tc>, window_params = [{transform_indices = @transform_0, window_bounds = array<i64: 128, 128>}, {pipeline_mode = #tpu.pipeline_mode<synchronous>, transform_indices = @transform_1, window_bounds = array<i64: 128, 128>}, {pipeline_mode = #tpu.pipeline_mode<synchronous>, transform_indices = @transform_2, window_bounds = array<i64: 1, 128>}, {transform_indices = @transform_3, window_bounds = array<i64: 128, 128>}]} {
    %c0_i32 = arith.constant 0 : i32
    %0 = arith.cmpi eq, %arg1, %c0_i32 : i32
    %1 = arith.extui %0 : i1 to i32
    %c0_i32_0 = arith.constant 0 : i32
    %2 = arith.cmpi ne, %1, %c0_i32_0 : i32
    scf.if %2 {
      %cst_9 = arith.constant 0.000000e+00 : f32
      %15 = vector.broadcast %cst_9 : f32 to vector<128x128xf32>
      %c0_10 = arith.constant 0 : index
      %c0_11 = arith.constant 0 : index
      %16 = vector.load %arg6[%c0_10, %c0_11] : memref<128x128xf32, #tpu.memory_space<vmem>>, vector<128x128xf32>
      tpu.vector_store %arg6[%c0_10, %c0_11], %15 {strides = array<i32>} : memref<128x128xf32, #tpu.memory_space<vmem>>, vector<128x128xf32>,
    } else {
    }
    %c0 = arith.constant 0 : index
    %c0_1 = arith.constant 0 : index
    %3 = vector.load %arg6[%c0, %c0_1] : memref<128x128xf32, #tpu.memory_space<vmem>>, vector<128x128xf32>
    %c0_2 = arith.constant 0 : index
    %c0_3 = arith.constant 0 : index
    %4 = vector.load %arg2[%c0_2, %c0_3] : memref<128x128xbf16, #tpu.memory_space<vmem>>, vector<128x128xbf16>
    %c128_i32 = arith.constant 128 : i32
    %5 = arith.muli %arg1, %c128_i32 : i32
    %6 = tpu.assume_multiple %5, 128 : i32
    %7 = arith.index_cast %6 : i32 to index
    %c0_4 = arith.constant 0 : index
    %8 = vector.load %arg3[%7, %c0_4] : memref<128x128xbf16, #tpu.memory_space<vmem>>, vector<128x128xbf16>
    %cst = arith.constant dense<0.000000e+00> : vector<128x128xf32>
    %9 = tpu.matmul %4, %8, %cst {dimension_numbers = #tpu.dot_dimension_numbers<[1], [0], [0], [1], [0, 0, 1, 1], [], []>} : vector<128x128xbf16>, vector<128x128xbf16>, vector<128x128xf32> -> vector<128x128xf32>
    %10 = arith.addf %3, %9 : vector<128x128xf32>
    %c0_5 = arith.constant 0 : index
    %c0_6 = arith.constant 0 : index
    %11 = vector.load %arg6[%c0_5, %c0_6] : memref<128x128xf32, #tpu.memory_space<vmem>>, vector<128x128xf32>
    tpu.vector_store %arg6[%c0_5, %c0_6], %10 {strides = array<i32>} : memref<128x128xf32, #tpu.memory_space<vmem>>, vector<128x128xf32>,
    %c0_i32_7 = arith.constant 0 : i32
    %12 = arith.cmpi eq, %arg1, %c0_i32_7 : i32
    %13 = arith.extui %12 : i1 to i32
    %c0_i32_8 = arith.constant 0 : i32
    %14 = arith.cmpi ne, %13, %c0_i32_8 : i32
    scf.if %14 {
      %c0_9 = arith.constant 0 : index
      %c0_10 = arith.constant 0 : index
      %15 = vector.load %arg6[%c0_9, %c0_10] : memref<128x128xf32, #tpu.memory_space<vmem>>, vector<128x128xf32>
      %c0_11 = arith.constant 0 : index
      %c0_12 = arith.constant 0 : index
      %16 = vector.load %arg4[%c0_11, %c0_12] : memref<1x128xf32, #tpu.memory_space<vmem>>, vector<1x128xf32>
      %17 = vector.broadcast %16 : vector<1x128xf32> to vector<128x128xf32>
      %18 = arith.addf %15, %17 : vector<128x128xf32>
      %19 = tpu.iota {dimensions = array<i32: 1>} : vector<128x128xi32>
      %c8_i32 = arith.constant 8 : i32
      %20 = vector.broadcast %c8_i32 : i32 to vector<128x128xi32>
      %21 = arith.cmpi slt, %19, %20 : vector<128x128xi32>
      %cst_13 = arith.constant -1.000000e+30 : f32
      %22 = vector.broadcast %cst_13 : f32 to vector<128x128xf32>
      %23 = arith.select %21, %18, %22 : vector<128x128xi1>, vector<128x128xf32>
      %cst_14 = arith.constant dense<0xFF800000> : vector<128xf32>
      %24 = vector.multi_reduction <maximumf>, %23, %cst_14 [1] : vector<128x128xf32> to vector<128xf32>
      %25 = vector.shape_cast %24 : vector<128xf32> to vector<128x1xf32>
      %26 = vector.broadcast %25 : vector<128x1xf32> to vector<128x128xf32>
      %27 = arith.subf %23, %26 : vector<128x128xf32>
      %28 = math.exp %27 : vector<128x128xf32>
      %cst_15 = arith.constant 0.000000e+00 : f32
      %29 = vector.broadcast %cst_15 : f32 to vector<128x128xf32>
      %30 = arith.select %21, %28, %29 : vector<128x128xi1>, vector<128x128xf32>
      %cst_16 = arith.constant dense<0.000000e+00> : vector<128xf32>
      %31 = vector.multi_reduction <add>, %30, %cst_16 [1] : vector<128x128xf32> to vector<128xf32>
      %32 = vector.shape_cast %31 : vector<128xf32> to vector<128x1xf32>
      %33 = math.log %32 : vector<128x1xf32>
      %34 = vector.broadcast %33 : vector<128x1xf32> to vector<128x128xf32>
      %35 = arith.subf %27, %34 : vector<128x128xf32>
      %c0_17 = arith.constant 0 : index
      %c0_18 = arith.constant 0 : index
      %36 = vector.load %arg5[%c0_17, %c0_18] : memref<128x128xf32, #tpu.memory_space<vmem>>, vector<128x128xf32>
      tpu.vector_store %arg5[%c0_17, %c0_18], %35 {strides = array<i32>} : memref<128x128xf32, #tpu.memory_space<vmem>>, vector<128x128xf32>,
    } else {
    }
    return
  }
  func.func @transform_0(%arg0: i32, %arg1: i32) -> (i32, i32) {
    %c0_i32 = arith.constant 0 : i32
    return %arg0, %arg1 : i32, i32
  }
  func.func @transform_1(%arg0: i32, %arg1: i32) -> (i32, i32) {
    %c0_i32 = arith.constant 0 : i32
    %c0_i32_0 = arith.constant 0 : i32
    %c0_i32_1 = arith.constant 0 : i32
    return %c0_i32, %c0_i32_0 : i32, i32
  }
  func.func @transform_2(%arg0: i32, %arg1: i32) -> (i32, i32) {
    %c0_i32 = arith.constant 0 : i32
    %c0_i32_0 = arith.constant 0 : i32
    %c0_i32_1 = arith.constant 0 : i32
    return %c0_i32, %c0_i32_0 : i32, i32
  }
  func.func @transform_3(%arg0: i32, %arg1: i32) -> (i32, i32) {
    %c0_i32 = arith.constant 0 : i32
    %c0_i32_0 = arith.constant 0 : i32
    return %arg0, %c0_i32 : i32, i32
  }
}

module attributes {stable_mosaic.version = 11 : i64} {
  func.func @_proj_kernel(%arg0: i32, %arg1: memref<128x128xbf16, #tpu.memory_space<vmem>>, %arg2: memref<128x128xbf16, #tpu.memory_space<vmem>>, %arg3: memref<128x128xbf16, #tpu.memory_space<vmem>>) attributes {dimension_semantics = [#tpu.dimension_semantics<parallel>], iteration_bounds = array<i64: 1>, scalar_prefetch = 0 : i64, scratch_operands = 0 : i64, tpu.core_type = #tpu.core_type<tc>, window_params = [{transform_indices = @transform_0, window_bounds = array<i64: 128, 128>}, {pipeline_mode = #tpu.pipeline_mode<synchronous>, transform_indices = @transform_1, window_bounds = array<i64: 128, 128>}, {transform_indices = @transform_2, window_bounds = array<i64: 128, 128>}]} {
    %c0 = arith.constant 0 : index
    %c0_0 = arith.constant 0 : index
    %0 = vector.load %arg1[%c0, %c0_0] : memref<128x128xbf16, #tpu.memory_space<vmem>>, vector<128x128xbf16>
    %c0_1 = arith.constant 0 : index
    %c0_2 = arith.constant 0 : index
    %1 = vector.load %arg2[%c0_1, %c0_2] : memref<128x128xbf16, #tpu.memory_space<vmem>>, vector<128x128xbf16>
    %cst = arith.constant dense<0.000000e+00> : vector<128x128xf32>
    %2 = tpu.matmul %0, %1, %cst {dimension_numbers = #tpu.dot_dimension_numbers<[1], [0], [0], [1], [0, 0, 1, 1], [], []>} : vector<128x128xbf16>, vector<128x128xbf16>, vector<128x128xf32> -> vector<128x128xf32>
    %3 = arith.truncf %2 : vector<128x128xf32> to vector<128x128xbf16>
    %c0_3 = arith.constant 0 : index
    %c0_4 = arith.constant 0 : index
    %4 = vector.load %arg3[%c0_3, %c0_4] : memref<128x128xbf16, #tpu.memory_space<vmem>>, vector<128x128xbf16>
    tpu.vector_store %arg3[%c0_3, %c0_4], %3 {strides = array<i32>} : memref<128x128xbf16, #tpu.memory_space<vmem>>, vector<128x128xbf16>,
    return
  }
  func.func @transform_0(%arg0: i32) -> (i32, i32) {
    %c0_i32 = arith.constant 0 : i32
    %c0_i32_0 = arith.constant 0 : i32
    return %arg0, %c0_i32 : i32, i32
  }
  func.func @transform_1(%arg0: i32) -> (i32, i32) {
    %c0_i32 = arith.constant 0 : i32
    %c0_i32_0 = arith.constant 0 : i32
    %c0_i32_1 = arith.constant 0 : i32
    return %c0_i32, %c0_i32_0 : i32, i32
  }
  func.func @transform_2(%arg0: i32) -> (i32, i32) {
    %c0_i32 = arith.constant 0 : i32
    %c0_i32_0 = arith.constant 0 : i32
    return %arg0, %c0_i32 : i32, i32
  }
}

module attributes {stable_mosaic.version = 11 : i64} {
  func.func @_agg_bias_proj_kernel(%arg0: i32, %arg1: i32, %arg2: memref<128x128xbf16, #tpu.memory_space<vmem>>, %arg3: memref<128x128xbf16, #tpu.memory_space<vmem>>, %arg4: memref<1x128xf32, #tpu.memory_space<vmem>>, %arg5: memref<128x128xbf16, #tpu.memory_space<vmem>>, %arg6: memref<128x128xbf16, #tpu.memory_space<vmem>>, %arg7: memref<128x128xf32, #tpu.memory_space<vmem>>) attributes {dimension_semantics = [#tpu.dimension_semantics<parallel>, #tpu.dimension_semantics<arbitrary>], iteration_bounds = array<i64: 1, 1>, scalar_prefetch = 0 : i64, scratch_operands = 1 : i64, tpu.core_type = #tpu.core_type<tc>, window_params = [{transform_indices = @transform_0, window_bounds = array<i64: 128, 128>}, {pipeline_mode = #tpu.pipeline_mode<synchronous>, transform_indices = @transform_1, window_bounds = array<i64: 128, 128>}, {pipeline_mode = #tpu.pipeline_mode<synchronous>, transform_indices = @transform_2, window_bounds = array<i64: 1, 128>}, {pipeline_mode = #tpu.pipeline_mode<synchronous>, transform_indices = @transform_3, window_bounds = array<i64: 128, 128>}, {transform_indices = @transform_4, window_bounds = array<i64: 128, 128>}]} {
    %c0_i32 = arith.constant 0 : i32
    %0 = arith.cmpi eq, %arg1, %c0_i32 : i32
    %1 = arith.extui %0 : i1 to i32
    %c0_i32_0 = arith.constant 0 : i32
    %2 = arith.cmpi ne, %1, %c0_i32_0 : i32
    scf.if %2 {
      %cst_9 = arith.constant 0.000000e+00 : f32
      %15 = vector.broadcast %cst_9 : f32 to vector<128x128xf32>
      %c0_10 = arith.constant 0 : index
      %c0_11 = arith.constant 0 : index
      %16 = vector.load %arg7[%c0_10, %c0_11] : memref<128x128xf32, #tpu.memory_space<vmem>>, vector<128x128xf32>
      tpu.vector_store %arg7[%c0_10, %c0_11], %15 {strides = array<i32>} : memref<128x128xf32, #tpu.memory_space<vmem>>, vector<128x128xf32>,
    } else {
    }
    %c0 = arith.constant 0 : index
    %c0_1 = arith.constant 0 : index
    %3 = vector.load %arg7[%c0, %c0_1] : memref<128x128xf32, #tpu.memory_space<vmem>>, vector<128x128xf32>
    %c0_2 = arith.constant 0 : index
    %c0_3 = arith.constant 0 : index
    %4 = vector.load %arg2[%c0_2, %c0_3] : memref<128x128xbf16, #tpu.memory_space<vmem>>, vector<128x128xbf16>
    %c128_i32 = arith.constant 128 : i32
    %5 = arith.muli %arg1, %c128_i32 : i32
    %6 = tpu.assume_multiple %5, 128 : i32
    %7 = arith.index_cast %6 : i32 to index
    %c0_4 = arith.constant 0 : index
    %8 = vector.load %arg3[%7, %c0_4] : memref<128x128xbf16, #tpu.memory_space<vmem>>, vector<128x128xbf16>
    %cst = arith.constant dense<0.000000e+00> : vector<128x128xf32>
    %9 = tpu.matmul %4, %8, %cst {dimension_numbers = #tpu.dot_dimension_numbers<[1], [0], [0], [1], [0, 0, 1, 1], [], []>} : vector<128x128xbf16>, vector<128x128xbf16>, vector<128x128xf32> -> vector<128x128xf32>
    %10 = arith.addf %3, %9 : vector<128x128xf32>
    %c0_5 = arith.constant 0 : index
    %c0_6 = arith.constant 0 : index
    %11 = vector.load %arg7[%c0_5, %c0_6] : memref<128x128xf32, #tpu.memory_space<vmem>>, vector<128x128xf32>
    tpu.vector_store %arg7[%c0_5, %c0_6], %10 {strides = array<i32>} : memref<128x128xf32, #tpu.memory_space<vmem>>, vector<128x128xf32>,
    %c0_i32_7 = arith.constant 0 : i32
    %12 = arith.cmpi eq, %arg1, %c0_i32_7 : i32
    %13 = arith.extui %12 : i1 to i32
    %c0_i32_8 = arith.constant 0 : i32
    %14 = arith.cmpi ne, %13, %c0_i32_8 : i32
    scf.if %14 {
      %c0_9 = arith.constant 0 : index
      %c0_10 = arith.constant 0 : index
      %15 = vector.load %arg7[%c0_9, %c0_10] : memref<128x128xf32, #tpu.memory_space<vmem>>, vector<128x128xf32>
      %c0_11 = arith.constant 0 : index
      %c0_12 = arith.constant 0 : index
      %16 = vector.load %arg4[%c0_11, %c0_12] : memref<1x128xf32, #tpu.memory_space<vmem>>, vector<1x128xf32>
      %17 = vector.broadcast %16 : vector<1x128xf32> to vector<128x128xf32>
      %18 = arith.addf %15, %17 : vector<128x128xf32>
      %19 = arith.truncf %18 : vector<128x128xf32> to vector<128x128xbf16>
      %c0_13 = arith.constant 0 : index
      %c0_14 = arith.constant 0 : index
      %20 = vector.load %arg5[%c0_13, %c0_14] : memref<128x128xbf16, #tpu.memory_space<vmem>>, vector<128x128xbf16>
      %cst_15 = arith.constant dense<0.000000e+00> : vector<128x128xf32>
      %21 = tpu.matmul %19, %20, %cst_15 {dimension_numbers = #tpu.dot_dimension_numbers<[1], [0], [0], [1], [0, 0, 1, 1], [], []>} : vector<128x128xbf16>, vector<128x128xbf16>, vector<128x128xf32> -> vector<128x128xf32>
      %22 = arith.truncf %21 : vector<128x128xf32> to vector<128x128xbf16>
      %c0_16 = arith.constant 0 : index
      %c0_17 = arith.constant 0 : index
      %23 = vector.load %arg6[%c0_16, %c0_17] : memref<128x128xbf16, #tpu.memory_space<vmem>>, vector<128x128xbf16>
      tpu.vector_store %arg6[%c0_16, %c0_17], %22 {strides = array<i32>} : memref<128x128xbf16, #tpu.memory_space<vmem>>, vector<128x128xbf16>,
    } else {
    }
    return
  }
  func.func @transform_0(%arg0: i32, %arg1: i32) -> (i32, i32) {
    %c0_i32 = arith.constant 0 : i32
    return %arg0, %arg1 : i32, i32
  }
  func.func @transform_1(%arg0: i32, %arg1: i32) -> (i32, i32) {
    %c0_i32 = arith.constant 0 : i32
    %c0_i32_0 = arith.constant 0 : i32
    %c0_i32_1 = arith.constant 0 : i32
    return %c0_i32, %c0_i32_0 : i32, i32
  }
  func.func @transform_2(%arg0: i32, %arg1: i32) -> (i32, i32) {
    %c0_i32 = arith.constant 0 : i32
    %c0_i32_0 = arith.constant 0 : i32
    %c0_i32_1 = arith.constant 0 : i32
    return %c0_i32, %c0_i32_0 : i32, i32
  }
  func.func @transform_3(%arg0: i32, %arg1: i32) -> (i32, i32) {
    %c0_i32 = arith.constant 0 : i32
    %c0_i32_0 = arith.constant 0 : i32
    %c0_i32_1 = arith.constant 0 : i32
    return %c0_i32, %c0_i32_0 : i32, i32
  }
  func.func @transform_4(%arg0: i32, %arg1: i32) -> (i32, i32) {
    %c0_i32 = arith.constant 0 : i32
    %c0_i32_0 = arith.constant 0 : i32
    return %arg0, %c0_i32 : i32, i32
  }
}

</mosaic_0001>

<bundles_post_ra>
// kernel: forward.5
= control target key start
LH: loop header
LB: loop body
LE: loop exit
PB: predicated region body
PF: predicated region fallthrough
CT: control target
= control target key end

     0   :  { %v355_v16 = vlaneseq  ;;  %s999_s1 = inlined_call_operand.vmem [shape: bf16[128,128], index: 1, kind: input, shape index: {}]   ;;  %s1000_s0 = inlined_call_operand.vmem [shape: bf16[128,128], index: 0, kind: input, shape index: {}]   ;;  %s1001_s2 = inlined_call_operand.vmem [shape: f32[1,128], index: 2, kind: input, shape index: {}]   ;;  %s1002_s3 = inlined_call_operand.vmem [shape: f32[128,128], index: 3, kind: output, shape index: {}]  }
   0x1   :  { %v653_v0 = vld [vmem:[%s999_s1] sm:$0xff]   ;;  %v654_v1 = vld [vmem:[%s999_s1 + $0x8] sm:$0xff]   ;;  %v655_v2 = vld [vmem:[%s999_s1 + $0x10] sm:$0xff]  }
   0x2   :  { %605 = vmatprep.subr.bf16.mxu0 %v653_v0  ;;  %637 = vmatprep.subr.bf16.mxu1 %v653_v0  ;;  %v656_v3 = vld [vmem:[%s999_s1 + $0x18] sm:$0xff]   ;;  %v661_v4 = vld [vmem:[%s1000_s0] sm:$0xff]   ;;  %v658_v7 = vld [vmem:[%s999_s1 + $0x28] sm:$0xff]   ;;  %v801_v17 = vand.u32 127, %v355_v16 }
   0x3   :  { %606 = vmatpush3.bf16.msra.mxu0 %v653_v0  ;;  %645 = vmatpush3.bf16.msra.mxu1 %v653_v0  ;;  %v662_v5 = vld [vmem:[%s1000_s0 + $0x20] sm:$0xff]   ;;  %v659_v8 = vld [vmem:[%s999_s1 + $0x30] sm:$0xff]   ;;  %v660_v9 = vld [vmem:[%s999_s1 + $0x38] sm:$0xff]  }
   0x4   :  { %607 = vmatprep.subr.bf16.mxu0 %v654_v1  ;;  %638 = vmatprep.subr.bf16.mxu1 %v654_v1  ;;  %v657_v6 = vld [vmem:[%s999_s1 + $0x20] sm:$0xff]   ;;  %v663_v10 = vld [vmem:[%s1000_s0 + $0x8] sm:$0xff]   ;;  %v665_v12 = vld [vmem:[%s1000_s0 + $0x10] sm:$0xff]   ;;  %vm357_vm0 = vcmp.lt.s32.totalorder %v801_v17, 8 }
   0x5   :  { %621 = vmatprep.mubr.bf16.mxu0 %v661_v4  ;;  %629 = vmatprep.mubr.bf16.mxu1 %v662_v5  ;;  %v664_v11 = vld [vmem:[%s1000_s0 + $0x28] sm:$0xff]   ;;  %v667_v13 = vld [vmem:[%s1000_s0 + $0x30] sm:$0xff]   ;;  %v666_v14 = vld [vmem:[%s1000_s0 + $0x18] sm:$0xff]  }
   0x6   :  { %v668_v15 = vld [vmem:[%s1000_s0 + $0x38] sm:$0xff]   ;;  %v588_v18 = vld [vmem:[%s1001_s2] ss:$0 sm:$0xff] }
   0x7   :  { %608 = vmatpush3.bf16.msra.mxu0 %v654_v1  ;;  %646 = vmatpush3.bf16.msra.mxu1 %v654_v1 }
   0x8   :  { %609 = vmatprep.subr.bf16.mxu0 %v655_v2  ;;  %639 = vmatprep.subr.bf16.mxu1 %v655_v2 }
   0xb   :  { %610 = vmatpush3.bf16.msra.mxu0 %v655_v2  ;;  %647 = vmatpush3.bf16.msra.mxu1 %v655_v2 }
   0xc   :  { %611 = vmatprep.subr.bf16.mxu0 %v656_v3  ;;  %640 = vmatprep.subr.bf16.mxu1 %v656_v3 }
   0xf   :  { %612 = vmatpush3.bf16.msra.mxu0 %v656_v3  ;;  %648 = vmatpush3.bf16.msra.mxu1 %v656_v3 }
  0x10   :  { %613 = vmatprep.subr.bf16.mxu0 %v657_v6  ;;  %641 = vmatprep.subr.bf16.mxu1 %v657_v6 }
  0x13   :  { %614 = vmatpush3.bf16.msra.mxu0 %v657_v6  ;;  %649 = vmatpush3.bf16.msra.mxu1 %v657_v6 }
  0x14   :  { %615 = vmatprep.subr.bf16.mxu0 %v658_v7  ;;  %642 = vmatprep.subr.bf16.mxu1 %v658_v7 }
  0x17   :  { %616 = vmatpush3.bf16.msra.mxu0 %v658_v7  ;;  %650 = vmatpush3.bf16.msra.mxu1 %v658_v7 }
  0x18   :  { %617 = vmatprep.subr.bf16.mxu0 %v659_v8  ;;  %643 = vmatprep.subr.bf16.mxu1 %v659_v8 }
  0x1b   :  { %618 = vmatpush3.bf16.msra.mxu0 %v659_v8  ;;  %651 = vmatpush3.bf16.msra.mxu1 %v659_v8 }
  0x1c   :  { %619 = vmatprep.subr.bf16.mxu0 %v660_v9  ;;  %644 = vmatprep.subr.bf16.mxu1 %v660_v9 }
  0x1f   :  { %620 = vmatpush3.bf16.msra.mxu0 %v660_v9  ;;  %652 = vmatpush3.bf16.msra.mxu1 %v660_v9 }
  0x22   :  { %622 = vmatmul.mubr.bf16.vlgmr.msra.gmra.mrb[0].mxu0 %v663_v10  ;;  %630 = vmatmul.mubr.bf16.vlgmr.msra.gmra.mrb[0].mxu1 %v664_v11 }
  0x23   :  { %625 = vmatprep.mubr.bf16.mxu0 %v665_v12  ;;  %633 = vmatprep.mubr.bf16.mxu1 %v667_v13 }
  0x2a   :  { %626 = vmatmul.mubr.bf16.gmra.mrb[4].mxu0 %v666_v14  ;;  %634 = vmatmul.mubr.bf16.gmra.mrb[4].mxu1 %v668_v15 }
  0xf5   :  { %v623_v19 = vpop.f32.mrb[0].mxu0  ;;  %v631_v20 = vpop.f32.mrb[0].mxu1 }
  0xf6   :  { %v341_v21 = vadd.f32 %v623_v19, %v588_v18  ;;  %v349_v22 = vadd.f32 %v631_v20, %v588_v18  ;;  %v218_v23 = vpop.f32.mrb[1].mxu0  ;;  %v250_v24 = vpop.f32.mrb[1].mxu1 }
  0xf7   :  { %v624_v25 = vpop.f32.mrb[2].mxu0  ;;  %v632_v26 = vpop.f32.mrb[2].mxu1  ;;  %v339_v27 = vadd.f32 %v588_v18, %v218_v23  ;;  %v347_v33 = vadd.f32 %v588_v18, %v250_v24 }
  0xf8   :  { %v342_v28 = vadd.f32 %v624_v25, %v588_v18  ;;  %v221_v29 = vpop.f32.mrb[3].mxu0  ;;  %v253_v30 = vpop.f32.mrb[3].mxu1  ;;  %v368_v31 = vsel %vm357_vm0, %v349_v22, -1e+30  ;;  %v360_v32 = vsel %vm357_vm0, %v341_v21, -1e+30  ;;  %v350_v34 = vadd.f32 %v632_v26, %v588_v18 }
  0xf9   :  { %394 = vmax.xlane.f32.xlu0 %v368_v31  ;;  %378 = vmax.xlane.f32.xlu1 %v360_v32  ;;  %v358_v35 = vsel %vm357_vm0, %v339_v27, -1e+30  ;;  %v340_v43 = vadd.f32 %v588_v18, %v221_v29  ;;  %v348_v44 = vadd.f32 %v588_v18, %v253_v30  ;;  %v366_v45 = vsel %vm357_vm0, %v347_v33, -1e+30 }
  0xfa   :  { %v361_v36 = vsel %vm357_vm0, %v342_v28, -1e+30  ;;  %v369_v46 = vsel %vm357_vm0, %v350_v34, -1e+30 }
  0xfb   :  { %v367_v51 = vsel %vm357_vm0, %v348_v44, -1e+30  ;;  %v359_v52 = vsel %vm357_vm0, %v340_v43, -1e+30 }
  0xfd   :  { %374 = vmax.xlane.f32.xlu0 %v358_v35  ;;  %380 = vmax.xlane.f32.xlu1 %v361_v36  ;;  %v627_v37 = vpop.f32.mrb[4].mxu0  ;;  %v635_v38 = vpop.f32.mrb[4].mxu1 }
  0xfe   :  { %v234_v39 = vpop.f32.mrb[5].mxu0  ;;  %v266_v40 = vpop.f32.mrb[5].mxu1  ;;  %v345_v49 = vadd.f32 %v627_v37, %v588_v18  ;;  %v353_v63 = vadd.f32 %v635_v38, %v588_v18 }
  0xff   :  { %v628_v41 = vpop.f32.mrb[6].mxu0  ;;  %v636_v42 = vpop.f32.mrb[6].mxu1  ;;  %v343_v55 = vadd.f32 %v588_v18, %v234_v39  ;;  %v351_v57 = vadd.f32 %v588_v18, %v266_v40 }
 0x100   :  { %v237_v47 = vpop.f32.mrb[7].mxu0  ;;  %v269_v48 = vpop.f32.mrb[7].mxu1  ;;  %v346_v50 = vadd.f32 %v628_v41, %v588_v18  ;;  %v364_v53 = vsel %vm357_vm0, %v345_v49, -1e+30  ;;  %v354_v0 = vadd.f32 %v636_v42, %v588_v18  ;;  %v843_v1 = vsel %vm357_vm0, %v353_v63, -1e+30 }
 0x101   :  { %390 = vmax.xlane.f32.xlu0 %v366_v45  ;;  %396 = vmax.xlane.f32.xlu1 %v369_v46  ;;  %v344_v56 = vadd.f32 %v588_v18, %v237_v47  ;;  %v352_v58 = vadd.f32 %v588_v18, %v269_v48  ;;  %v362_v59 = vsel %vm357_vm0, %v343_v55, -1e+30  ;;  %v833_v61 = vsel %vm357_vm0, %v351_v57, -1e+30 }
 0x102   :  { %v365_v54 = vsel %vm357_vm0, %v346_v50, -1e+30  ;;  %v847_v2 = vsel %vm357_vm0, %v354_v0, -1e+30 }
 0x103   :  { %v363_v60 = vsel %vm357_vm0, %v344_v56, -1e+30  ;;  %v837_v62 = vsel %vm357_vm0, %v352_v58, -1e+30 }
 0x105   :  { %392 = vmax.xlane.f32.xlu1 %v367_v51  ;;  %376 = vmax.xlane.f32.xlu0 %v359_v52 }
 0x109   :  { %386 = vmax.xlane.f32.xlu0 %v364_v53  ;;  %388 = vmax.xlane.f32.xlu1 %v365_v54 }
 0x10d   :  { %382 = vmax.xlane.f32.xlu0 %v362_v59  ;;  %384 = vmax.xlane.f32.xlu1 %v363_v60 }
 0x111   :  { %398 = vmax.xlane.f32.xlu0 %v833_v61  ;;  %400 = vmax.xlane.f32.xlu1 %v837_v62 }
 0x115   :  { %402 = vmax.xlane.f32.xlu0 %v843_v1  ;;  %404 = vmax.xlane.f32.xlu1 %v847_v2 }
 0x186   :  { %v395_v3 = vpop.xlane.xlu0 %394  ;;  %v379_v4 = vpop.xlane.xlu1 %378 }
 0x187   :  { %v851_v5 = vsub.f32 %v368_v31, %v395_v3  ;;  %v853_v6 = vsub.f32 %v360_v32, %v379_v4 }
 0x189   :  { %v442_v7 = vmul.f32 1.442695, %v851_v5  ;;  %v426_v8 = vmul.f32 1.442695, %v853_v6 }
 0x18a   :  { %v375_v9 = vpop.xlane.xlu0 %374  ;;  %v381_v10 = vpop.xlane.xlu1 %380 }
 0x18b   :  { %v857_v11 = vsub.f32 %v358_v35, %v375_v9  ;;  %v859_v12 = vsub.f32 %v361_v36, %v381_v10  ;;  %669 = vpow2.f32 %v426_v8 }
 0x18c   :  { %671 = vpow2.f32 %v442_v7 }
 0x18d   :  { %v422_v13 = vmul.f32 1.442695, %v857_v11  ;;  %v428_v14 = vmul.f32 1.442695, %v859_v12 }
 0x18e   :  { %v391_v15 = vpop.xlane.xlu0 %390  ;;  %v397_v16 = vpop.xlane.xlu1 %396 }
 0x18f   :  { %v863_v18 = vsub.f32 %v366_v45, %v391_v15  ;;  %v865_v19 = vsub.f32 %v369_v46, %v397_v16  ;;  %673 = vpow2.f32 %v428_v14 }
 0x190   :  { %675 = vpow2.f32 %v422_v13 }
 0x191   :  { %v438_v20 = vmul.f32 1.442695, %v863_v18  ;;  %v444_v21 = vmul.f32 1.442695, %v865_v19 }
 0x192   :  { %v393_v22 = vpop.xlane.xlu1 %392  ;;  %v377_v23 = vpop.xlane.xlu0 %376 }
 0x193   :  { %v869_v24 = vsub.f32 %v367_v51, %v393_v22  ;;  %v871_v25 = vsub.f32 %v359_v52, %v377_v23  ;;  %677 = vpow2.f32 %v444_v21 }
 0x194   :  { %679 = vpow2.f32 %v438_v20 }
 0x195   :  { %v424_v26 = vmul.f32 1.442695, %v871_v25  ;;  %v670_v27 = vpop.eup %669  ;;  %v440_v28 = vmul.f32 1.442695, %v869_v24 }
 0x196   :  { %v387_v29 = vpop.xlane.xlu0 %386  ;;  %v389_v30 = vpop.xlane.xlu1 %388  ;;  %v456_v34 = vsel %vm357_vm0, %v670_v27, 0.0 }
 0x197   :  { %v672_v31 = vpop.eup %671  ;;  %v875_v32 = vsub.f32 %v364_v53, %v387_v29  ;;  %v877_v33 = vsub.f32 %v365_v54, %v389_v30  ;;  %681 = vpow2.f32 %v424_v26  ;;  %474 = vadd.xlane.f32.xlu0 %v456_v34 }
 0x198   :  { %683 = vpow2.f32 %v440_v28  ;;  %v464_v40 = vsel %vm357_vm0, %v672_v31, 0.0 }
 0x199   :  { %v434_v35 = vmul.f32 1.442695, %v875_v32  ;;  %v674_v36 = vpop.eup %673  ;;  %v436_v37 = vmul.f32 1.442695, %v877_v33 }
 0x19a   :  { %v383_v38 = vpop.xlane.xlu0 %382  ;;  %v385_v39 = vpop.xlane.xlu1 %384  ;;  %v457_v44 = vsel %vm357_vm0, %v674_v36, 0.0 }
 0x19b   :  { %v676_v41 = vpop.eup %675  ;;  %685 = vpow2.f32 %v434_v35  ;;  %v885_v42 = vsub.f32 %v362_v59, %v383_v38  ;;  %v887_v43 = vsub.f32 %v363_v60, %v385_v39  ;;  %490 = vadd.xlane.f32.xlu0 %v464_v40  ;;  %476 = vadd.xlane.f32.xlu1 %v457_v44 }
 0x19c   :  { %687 = vpow2.f32 %v436_v37  ;;  %v454_v50 = vsel %vm357_vm0, %v676_v41, 0.0 }
 0x19d   :  { %v430_v45 = vmul.f32 1.442695, %v885_v42  ;;  %v678_v46 = vpop.eup %677  ;;  %v432_v47 = vmul.f32 1.442695, %v887_v43 }
 0x19e   :  { %v399_v48 = vpop.xlane.xlu0 %398  ;;  %v401_v49 = vpop.xlane.xlu1 %400  ;;  %v465_v54 = vsel %vm357_vm0, %v678_v46, 0.0 }
 0x19f   :  { %v680_v51 = vpop.eup %679  ;;  %689 = vpow2.f32 %v430_v45  ;;  %v896_v52 = vsub.f32 %v833_v61, %v399_v48  ;;  %v899_v53 = vsub.f32 %v837_v62, %v401_v49  ;;  %470 = vadd.xlane.f32.xlu0 %v454_v50  ;;  %492 = vadd.xlane.f32.xlu1 %v465_v54 }
 0x1a0   :  { %691 = vpow2.f32 %v432_v47  ;;  %v462_v60 = vsel %vm357_vm0, %v680_v51, 0.0 }
 0x1a1   :  { %v446_v55 = vmul.f32 1.442695, %v896_v52  ;;  %v682_v56 = vpop.eup %681  ;;  %v448_v57 = vmul.f32 1.442695, %v899_v53 }
 0x1a2   :  { %v403_v58 = vpop.xlane.xlu0 %402  ;;  %v405_v59 = vpop.xlane.xlu1 %404  ;;  %v455_v63 = vsel %vm357_vm0, %v682_v56, 0.0 }
 0x1a3   :  { %693 = vpow2.f32 %v446_v55  ;;  %v908_v61 = vsub.f32 %v843_v1, %v403_v58  ;;  %v911_v62 = vsub.f32 %v847_v2, %v405_v59  ;;  %v684_v0 = vpop.eup %683  ;;  %486 = vadd.xlane.f32.xlu0 %v462_v60  ;;  %472 = vadd.xlane.f32.xlu1 %v455_v63 }
 0x1a4   :  { %695 = vpow2.f32 %v448_v57  ;;  %v463_v1 = vsel %vm357_vm0, %v684_v0, 0.0 }
 0x1a5   :  { %v686_v3 = vpop.eup %685  ;;  %v450_v4 = vmul.f32 1.442695, %v908_v61  ;;  %v452_v7 = vmul.f32 1.442695, %v911_v62 }
 0x1a6   :  { %v460_v8 = vsel %vm357_vm0, %v686_v3, 0.0  ;;  %v688_v2 = vpop.eup %687 }
 0x1a7   :  { %697 = vpow2.f32 %v450_v4  ;;  %482 = vadd.xlane.f32.xlu0 %v460_v8  ;;  %488 = vadd.xlane.f32.xlu1 %v463_v1  ;;  %v461_v13 = vsel %vm357_vm0, %v688_v2, 0.0 }
 0x1a8   :  { %699 = vpow2.f32 %v452_v7 }
 0x1a9   :  { %v690_v9 = vpop.eup %689 }
 0x1aa   :  { %v458_v10 = vsel %vm357_vm0, %v690_v9, 0.0  ;;  %v692_v14 = vpop.eup %691 }
 0x1ab   :  { %478 = vadd.xlane.f32.xlu0 %v458_v10  ;;  %484 = vadd.xlane.f32.xlu1 %v461_v13  ;;  %v459_v20 = vsel %vm357_vm0, %v692_v14, 0.0 }
 0x1ad   :  { %v694_v15 = vpop.eup %693 }
 0x1ae   :  { %v466_v16 = vsel %vm357_vm0, %v694_v15, 0.0  ;;  %v696_v21 = vpop.eup %695 }
 0x1af   :  { %494 = vadd.xlane.f32.xlu0 %v466_v16  ;;  %480 = vadd.xlane.f32.xlu1 %v459_v20  ;;  %v467_v26 = vsel %vm357_vm0, %v696_v21, 0.0 }
 0x1b1   :  { %v698_v22 = vpop.eup %697 }
 0x1b2   :  { %v468_v23 = vsel %vm357_vm0, %v698_v22, 0.0  ;;  %v700_v27 = vpop.eup %699 }
 0x1b3   :  { %498 = vadd.xlane.f32.xlu0 %v468_v23  ;;  %496 = vadd.xlane.f32.xlu1 %v467_v26  ;;  %v469_v28 = vsel %vm357_vm0, %v700_v27, 0.0 }
 0x1b7   :  { %500 = vadd.xlane.f32.xlu1 %v469_v28 }
 0x224   :  { %v475_v29 = vpop.xlane.xlu0 %474 }
 0x225   :  { %701 = vlog2.f32 %v475_v29 }
 0x228   :  { %v491_v30 = vpop.xlane.xlu0 %490  ;;  %v477_v31 = vpop.xlane.xlu1 %476 }
 0x229   :  { %703 = vlog2.f32 %v491_v30 }
 0x22a   :  { %705 = vlog2.f32 %v477_v31 }
 0x22c   :  { %v471_v34 = vpop.xlane.xlu0 %470  ;;  %v493_v35 = vpop.xlane.xlu1 %492 }
 0x22d   :  { %707 = vlog2.f32 %v471_v34 }
 0x22e   :  { %709 = vlog2.f32 %v493_v35 }
 0x22f   :  { %v702_v36 = vpop.eup %701 }
 0x230   :  { %v507_v37 = vmul.f32 0.6931472, %v702_v36  ;;  %v487_v38 = vpop.xlane.xlu0 %486  ;;  %v473_v39 = vpop.xlane.xlu1 %472 }
 0x231   :  { %711 = vlog2.f32 %v487_v38 }
 0x232   :  { %v536_v40 = vsub.f32 %v853_v6, %v507_v37  ;;  %713 = vlog2.f32 %v473_v39 }
 0x233   :  { %v704_v17 = vpop.eup %703 }
 0x234   :  { %v706_v41 = vpop.eup %705  ;;  %552 = vst [vmem:[%s1002_s3 + $0x10] sm:$0xff] %v536_v40  ;;  %v523_v44 = vmul.f32 0.6931472, %v704_v17  ;;  %v483_v45 = vpop.xlane.xlu0 %482 }
 0x235   :  { %v489_v46 = vpop.xlane.xlu1 %488  ;;  %v509_v47 = vmul.f32 0.6931472, %v706_v41  ;;  %715 = vlog2.f32 %v483_v45 }
 0x236   :  { %v544_v48 = vsub.f32 %v851_v5, %v523_v44  ;;  %717 = vlog2.f32 %v489_v46 }
 0x237   :  { %v708_v49 = vpop.eup %707  ;;  %v537_v50 = vsub.f32 %v859_v12, %v509_v47 }
 0x238   :  { %v710_v51 = vpop.eup %709  ;;  %560 = vst [vmem:[%s1002_s3 + $0x50] sm:$0xff] %v544_v48  ;;  %v503_v6 = vmul.f32 0.6931472, %v708_v49  ;;  %v479_v54 = vpop.xlane.xlu0 %478 }
 0x239   :  { %v485_v55 = vpop.xlane.xlu1 %484  ;;  %553 = vst [vmem:[%s1002_s3 + $0x18] sm:$0xff] %v537_v50  ;;  %v525_v56 = vmul.f32 0.6931472, %v710_v51  ;;  %719 = vlog2.f32 %v479_v54 }
 0x23a   :  { %v534_v5 = vsub.f32 %v857_v11, %v503_v6  ;;  %721 = vlog2.f32 %v485_v55 }
 0x23b   :  { %v712_v57 = vpop.eup %711  ;;  %v545_v12 = vsub.f32 %v865_v19, %v525_v56 }
 0x23c   :  { %v714_v58 = vpop.eup %713  ;;  %550 = vst [vmem:[%s1002_s3] sm:$0xff] %v534_v5  ;;  %v519_v59 = vmul.f32 0.6931472, %v712_v57  ;;  %v495_v60 = vpop.xlane.xlu0 %494 }
 0x23d   :  { %v481_v63 = vpop.xlane.xlu1 %480  ;;  %561 = vst [vmem:[%s1002_s3 + $0x58] sm:$0xff] %v545_v12  ;;  %v505_v0 = vmul.f32 0.6931472, %v714_v58  ;;  %723 = vlog2.f32 %v495_v60 }
 0x23e   :  { %v542_v11 = vsub.f32 %v863_v18, %v519_v59  ;;  %725 = vlog2.f32 %v481_v63 }
 0x23f   :  { %v716_v3 = vpop.eup %715  ;;  %v535_v19 = vsub.f32 %v871_v25, %v505_v0 }
 0x240   :  { %v718_v4 = vpop.eup %717  ;;  %558 = vst [vmem:[%s1002_s3 + $0x40] sm:$0xff] %v542_v11  ;;  %v515_v7 = vmul.f32 0.6931472, %v716_v3  ;;  %v499_v8 = vpop.xlane.xlu0 %498 }
 0x241   :  { %v497_v1 = vpop.xlane.xlu1 %496  ;;  %551 = vst [vmem:[%s1002_s3 + $0x8] sm:$0xff] %v535_v19  ;;  %v521_v2 = vmul.f32 0.6931472, %v718_v4  ;;  %727 = vlog2.f32 %v499_v8 }
 0x242   :  { %v540_v18 = vsub.f32 %v875_v32, %v515_v7  ;;  %729 = vlog2.f32 %v497_v1 }
 0x243   :  { %v720_v9 = vpop.eup %719  ;;  %v543_v25 = vsub.f32 %v869_v24, %v521_v2 }
 0x244   :  { %v722_v10 = vpop.eup %721  ;;  %556 = vst [vmem:[%s1002_s3 + $0x30] sm:$0xff] %v540_v18  ;;  %v511_v13 = vmul.f32 0.6931472, %v720_v9 }
 0x245   :  { %v501_v14 = vpop.xlane.xlu1 %500  ;;  %559 = vst [vmem:[%s1002_s3 + $0x48] sm:$0xff] %v543_v25  ;;  %v517_v15 = vmul.f32 0.6931472, %v722_v10 }
 0x246   :  { %731 = vlog2.f32 %v501_v14  ;;  %v538_v16 = vsub.f32 %v885_v42, %v511_v13 }
 0x247   :  { %v724_v32 = vpop.eup %723  ;;  %v541_v20 = vsub.f32 %v877_v33, %v517_v15 }
 0x248   :  { %v726_v21 = vpop.eup %725  ;;  %554 = vst [vmem:[%s1002_s3 + $0x20] sm:$0xff] %v538_v16  ;;  %v527_v24 = vmul.f32 0.6931472, %v724_v32 }
 0x249   :  { %557 = vst [vmem:[%s1002_s3 + $0x38] sm:$0xff] %v541_v20  ;;  %v513_v22 = vmul.f32 0.6931472, %v726_v21 }
 0x24a   :  { %v546_v23 = vsub.f32 %v896_v52, %v527_v24 }
 0x24b   :  { %v728_v26 = vpop.eup %727  ;;  %v539_v27 = vsub.f32 %v887_v43, %v513_v22 }
 0x24c   :  { %v730_v42 = vpop.eup %729  ;;  %562 = vst [vmem:[%s1002_s3 + $0x60] sm:$0xff] %v546_v23  ;;  %v531_v33 = vmul.f32 0.6931472, %v728_v26 }
 0x24d   :  { %555 = vst [vmem:[%s1002_s3 + $0x28] sm:$0xff] %v539_v27  ;;  %v529_v28 = vmul.f32 0.6931472, %v730_v42 }
 0x24e   :  { %v548_v29 = vsub.f32 %v908_v61, %v531_v33 }
 0x24f   :  { %v547_v31 = vsub.f32 %v899_v53, %v529_v28 }
 0x250   :  { %v732_v30 = vpop.eup %731  ;;  %564 = vst [vmem:[%s1002_s3 + $0x70] sm:$0xff] %v548_v29 }
 0x251   :  { %v533_v43 = vmul.f32 0.6931472, %v732_v30  ;;  %563 = vst [vmem:[%s1002_s3 + $0x68] sm:$0xff] %v547_v31 }
 0x253   :  { %v549_v52 = vsub.f32 %v911_v62, %v533_v43 }
 0x255   :  { %565 = vst [vmem:[%s1002_s3 + $0x78] sm:$0xff] %v549_v52 }

// kernel: forward.3
= control target key start
LH: loop header
LB: loop body
LE: loop exit
PB: predicated region body
PF: predicated region fallthrough
CT: control target
= control target key end

     0   :  { %s583_s1 = inlined_call_operand.vmem [shape: bf16[128,128], index: 1, kind: input, shape index: {}]   ;;  %s584_s0 = inlined_call_operand.vmem [shape: bf16[128,128], index: 0, kind: input, shape index: {}]   ;;  %s585_s2 = inlined_call_operand.vmem [shape: bf16[128,128], index: 2, kind: output, shape index: {}]  }
   0x1   :  { %v480_v0 = vld [vmem:[%s583_s1] sm:$0xff]   ;;  %v481_v1 = vld [vmem:[%s583_s1 + $0x8] sm:$0xff]   ;;  %v482_v2 = vld [vmem:[%s583_s1 + $0x10] sm:$0xff]  }
   0x2   :  { %432 = vmatprep.subr.bf16.mxu0 %v480_v0  ;;  %464 = vmatprep.subr.bf16.mxu1 %v480_v0  ;;  %v483_v3 = vld [vmem:[%s583_s1 + $0x18] sm:$0xff]   ;;  %v488_v4 = vld [vmem:[%s584_s0] sm:$0xff]   ;;  %v485_v7 = vld [vmem:[%s583_s1 + $0x28] sm:$0xff]  }
   0x3   :  { %433 = vmatpush3.bf16.msra.mxu0 %v480_v0  ;;  %472 = vmatpush3.bf16.msra.mxu1 %v480_v0  ;;  %v489_v5 = vld [vmem:[%s584_s0 + $0x20] sm:$0xff]   ;;  %v486_v8 = vld [vmem:[%s583_s1 + $0x30] sm:$0xff]   ;;  %v487_v9 = vld [vmem:[%s583_s1 + $0x38] sm:$0xff]  }
   0x4   :  { %434 = vmatprep.subr.bf16.mxu0 %v481_v1  ;;  %465 = vmatprep.subr.bf16.mxu1 %v481_v1  ;;  %v484_v6 = vld [vmem:[%s583_s1 + $0x20] sm:$0xff]   ;;  %v490_v10 = vld [vmem:[%s584_s0 + $0x8] sm:$0xff]   ;;  %v492_v12 = vld [vmem:[%s584_s0 + $0x10] sm:$0xff]  }
   0x5   :  { %448 = vmatprep.mubr.bf16.mxu0 %v488_v4  ;;  %456 = vmatprep.mubr.bf16.mxu1 %v489_v5  ;;  %v491_v11 = vld [vmem:[%s584_s0 + $0x28] sm:$0xff]   ;;  %v493_v13 = vld [vmem:[%s584_s0 + $0x30] sm:$0xff]   ;;  %v494_v14 = vld [vmem:[%s584_s0 + $0x18] sm:$0xff]  }
   0x6   :  { %v495_v15 = vld [vmem:[%s584_s0 + $0x38] sm:$0xff]  }
   0x7   :  { %435 = vmatpush3.bf16.msra.mxu0 %v481_v1  ;;  %473 = vmatpush3.bf16.msra.mxu1 %v481_v1 }
   0x8   :  { %436 = vmatprep.subr.bf16.mxu0 %v482_v2  ;;  %466 = vmatprep.subr.bf16.mxu1 %v482_v2 }
   0xb   :  { %437 = vmatpush3.bf16.msra.mxu0 %v482_v2  ;;  %474 = vmatpush3.bf16.msra.mxu1 %v482_v2 }
   0xc   :  { %438 = vmatprep.subr.bf16.mxu0 %v483_v3  ;;  %467 = vmatprep.subr.bf16.mxu1 %v483_v3 }
   0xf   :  { %439 = vmatpush3.bf16.msra.mxu0 %v483_v3  ;;  %475 = vmatpush3.bf16.msra.mxu1 %v483_v3 }
  0x10   :  { %440 = vmatprep.subr.bf16.mxu0 %v484_v6  ;;  %468 = vmatprep.subr.bf16.mxu1 %v484_v6 }
  0x13   :  { %441 = vmatpush3.bf16.msra.mxu0 %v484_v6  ;;  %476 = vmatpush3.bf16.msra.mxu1 %v484_v6 }
  0x14   :  { %442 = vmatprep.subr.bf16.mxu0 %v485_v7  ;;  %469 = vmatprep.subr.bf16.mxu1 %v485_v7 }
  0x17   :  { %443 = vmatpush3.bf16.msra.mxu0 %v485_v7  ;;  %477 = vmatpush3.bf16.msra.mxu1 %v485_v7 }
  0x18   :  { %444 = vmatprep.subr.bf16.mxu0 %v486_v8  ;;  %470 = vmatprep.subr.bf16.mxu1 %v486_v8 }
  0x1b   :  { %445 = vmatpush3.bf16.msra.mxu0 %v486_v8  ;;  %478 = vmatpush3.bf16.msra.mxu1 %v486_v8 }
  0x1c   :  { %446 = vmatprep.subr.bf16.mxu0 %v487_v9  ;;  %471 = vmatprep.subr.bf16.mxu1 %v487_v9 }
  0x1f   :  { %447 = vmatpush3.bf16.msra.mxu0 %v487_v9  ;;  %479 = vmatpush3.bf16.msra.mxu1 %v487_v9 }
  0x22   :  { %449 = vmatmul.mubr.bf16.vlgmr.msra.gmra.mrb[0].mxu0 %v490_v10  ;;  %457 = vmatmul.mubr.bf16.vlgmr.msra.gmra.mrb[0].mxu1 %v491_v11 }
  0x23   :  { %452 = vmatprep.mubr.bf16.mxu0 %v492_v12  ;;  %460 = vmatprep.mubr.bf16.mxu1 %v493_v13 }
  0x2a   :  { %453 = vmatmul.mubr.bf16.gmra.mrb[4].mxu0 %v494_v14  ;;  %461 = vmatmul.mubr.bf16.gmra.mrb[4].mxu1 %v495_v15 }
  0xf5   :  { %v450_v16 = vpop.f32.mrb[0].mxu0  ;;  %v458_v17 = vpop.f32.mrb[0].mxu1 }
  0xf6   :  { %v174_v18 = vpop.f32.mrb[1].mxu0  ;;  %v206_v19 = vpop.f32.mrb[1].mxu1 }
  0xf7   :  { %v451_v20 = vpop.f32.mrb[2].mxu0  ;;  %v459_v21 = vpop.f32.mrb[2].mxu1 }
  0xf8   :  { %v377_v22 = vpack.c.bf16 %v451_v20, %v450_v16  ;;  %v397_v23 = vpack.c.bf16 %v459_v21, %v458_v17  ;;  %v177_v24 = vpop.f32.mrb[3].mxu0  ;;  %v209_v25 = vpop.f32.mrb[3].mxu1 }
  0xf9   :  { %v372_v26 = vpack.c.bf16 %v177_v24, %v174_v18  ;;  %v392_v27 = vpack.c.bf16 %v209_v25, %v206_v19 }
  0xfa   :  { %409 = vst [vmem:[%s585_s2 + $0x8] sm:$0xff] %v377_v22   ;;  %413 = vst [vmem:[%s585_s2 + $0x28] sm:$0xff] %v397_v23  }
  0xfb   :  { %373 = vst [vmem:[%s585_s2] sm:$0xff] %v372_v26   ;;  %412 = vst [vmem:[%s585_s2 + $0x20] sm:$0xff] %v392_v27  }
  0xfd   :  { %v454_v28 = vpop.f32.mrb[4].mxu0  ;;  %v462_v29 = vpop.f32.mrb[4].mxu1 }
  0xfe   :  { %v190_v30 = vpop.f32.mrb[5].mxu0  ;;  %v222_v31 = vpop.f32.mrb[5].mxu1 }
  0xff   :  { %v455_v32 = vpop.f32.mrb[6].mxu0  ;;  %v463_v33 = vpop.f32.mrb[6].mxu1 }
 0x100   :  { %v387_v34 = vpack.c.bf16 %v455_v32, %v454_v28  ;;  %v407_v35 = vpack.c.bf16 %v463_v33, %v462_v29  ;;  %v193_v36 = vpop.f32.mrb[7].mxu0  ;;  %v225_v37 = vpop.f32.mrb[7].mxu1 }
 0x101   :  { %v382_v38 = vpack.c.bf16 %v193_v36, %v190_v30  ;;  %v402_v39 = vpack.c.bf16 %v225_v37, %v222_v31 }
 0x102   :  { %411 = vst [vmem:[%s585_s2 + $0x18] sm:$0xff] %v387_v34   ;;  %415 = vst [vmem:[%s585_s2 + $0x38] sm:$0xff] %v407_v35  }
 0x103   :  { %410 = vst [vmem:[%s585_s2 + $0x10] sm:$0xff] %v382_v38   ;;  %414 = vst [vmem:[%s585_s2 + $0x30] sm:$0xff] %v402_v39  }

// kernel: forward.4
= control target key start
LH: loop header
LB: loop body
LE: loop exit
PB: predicated region body
PF: predicated region fallthrough
CT: control target
= control target key end

     0   :  { %s961_s1 = inlined_call_operand.vmem [shape: bf16[128,128], index: 1, kind: input, shape index: {}]   ;;  %s962_s0 = inlined_call_operand.vmem [shape: bf16[128,128], index: 0, kind: input, shape index: {}]   ;;  %s963_s3 = inlined_call_operand.vmem [shape: bf16[128,128], index: 3, kind: input, shape index: {}]   ;;  %s964_s2 = inlined_call_operand.vmem [shape: f32[1,128], index: 2, kind: input, shape index: {}]   ;;  %s965_s4 = inlined_call_operand.vmem [shape: bf16[128,128], index: 4, kind: output, shape index: {}]  }
   0x1   :  { %v813_v0 = vld [vmem:[%s961_s1] sm:$0xff]   ;;  %v814_v1 = vld [vmem:[%s961_s1 + $0x8] sm:$0xff]   ;;  %v815_v2 = vld [vmem:[%s961_s1 + $0x10] sm:$0xff]  }
   0x2   :  { %749 = vmatprep.subr.bf16.mxu0 %v813_v0  ;;  %v816_v3 = vld [vmem:[%s961_s1 + $0x18] sm:$0xff]   ;;  %v821_v4 = vld [vmem:[%s962_s0] sm:$0xff]   ;;  %v818_v6 = vld [vmem:[%s961_s1 + $0x28] sm:$0xff]  }
   0x3   :  { %750 = vmatpush3.bf16.msra.mxu0 %v813_v0  ;;  %765 = vmatprep.mubr.bf16.mxu0 %v821_v4  ;;  %v817_v5 = vld [vmem:[%s961_s1 + $0x20] sm:$0xff]   ;;  %v830_v8 = vld [vmem:[%s963_s3 + $0x8] sm:$0xff]   ;;  %v819_v9 = vld [vmem:[%s961_s1 + $0x30] sm:$0xff]  }
   0x4   :  { %751 = vmatprep.subr.bf16.mxu0 %v814_v1  ;;  %v829_v7 = vld [vmem:[%s963_s3] sm:$0xff]   ;;  %v831_v10 = vld [vmem:[%s963_s3 + $0x10] sm:$0xff]   ;;  %v820_v11 = vld [vmem:[%s961_s1 + $0x38] sm:$0xff]  }
   0x5   :  { %781 = vmatprep.subr.bf16.mxu1 %v829_v7  ;;  %v832_v12 = vld [vmem:[%s963_s3 + $0x18] sm:$0xff]   ;;  %v833_v13 = vld [vmem:[%s963_s3 + $0x20] sm:$0xff]   ;;  %v822_v14 = vld [vmem:[%s962_s0 + $0x8] sm:$0xff]  }
   0x6   :  { %782 = vmatpush3.bf16.msra.mxu1 %v829_v7  ;;  %v823_v15 = vld [vmem:[%s962_s0 + $0x10] sm:$0xff]   ;;  %v834_v16 = vld [vmem:[%s963_s3 + $0x28] sm:$0xff]   ;;  %v824_v17 = vld [vmem:[%s962_s0 + $0x18] sm:$0xff]  }
   0x7   :  { %752 = vmatpush3.bf16.msra.mxu0 %v814_v1  ;;  %783 = vmatprep.subr.bf16.mxu1 %v830_v8  ;;  %v825_v18 = vld [vmem:[%s962_s0 + $0x20] sm:$0xff]   ;;  %v826_v19 = vld [vmem:[%s962_s0 + $0x28] sm:$0xff]   ;;  %v827_v20 = vld [vmem:[%s962_s0 + $0x30] sm:$0xff]  }
   0x8   :  { %753 = vmatprep.subr.bf16.mxu0 %v815_v2  ;;  %v828_v21 = vld [vmem:[%s962_s0 + $0x38] sm:$0xff]   ;;  %v835_v22 = vld [vmem:[%s963_s3 + $0x30] sm:$0xff]   ;;  %v629_v25 = vld [vmem:[%s964_s2] ss:$0 sm:$0xff] }
   0x9   :  { %v836_v23 = vld [vmem:[%s963_s3 + $0x38] sm:$0xff]  }
   0xa   :  { %784 = vmatpush3.bf16.msra.mxu1 %v830_v8 }
   0xb   :  { %754 = vmatpush3.bf16.msra.mxu0 %v815_v2  ;;  %785 = vmatprep.subr.bf16.mxu1 %v831_v10 }
   0xc   :  { %755 = vmatprep.subr.bf16.mxu0 %v816_v3 }
   0xe   :  { %786 = vmatpush3.bf16.msra.mxu1 %v831_v10 }
   0xf   :  { %756 = vmatpush3.bf16.msra.mxu0 %v816_v3  ;;  %787 = vmatprep.subr.bf16.mxu1 %v832_v12 }
  0x10   :  { %757 = vmatprep.subr.bf16.mxu0 %v817_v5 }
  0x12   :  { %788 = vmatpush3.bf16.msra.mxu1 %v832_v12 }
  0x13   :  { %758 = vmatpush3.bf16.msra.mxu0 %v817_v5  ;;  %789 = vmatprep.subr.bf16.mxu1 %v833_v13 }
  0x14   :  { %759 = vmatprep.subr.bf16.mxu0 %v818_v6 }
  0x16   :  { %790 = vmatpush3.bf16.msra.mxu1 %v833_v13 }
  0x17   :  { %760 = vmatpush3.bf16.msra.mxu0 %v818_v6  ;;  %791 = vmatprep.subr.bf16.mxu1 %v834_v16 }
  0x18   :  { %761 = vmatprep.subr.bf16.mxu0 %v819_v9 }
  0x1a   :  { %792 = vmatpush3.bf16.msra.mxu1 %v834_v16 }
  0x1b   :  { %762 = vmatpush3.bf16.msra.mxu0 %v819_v9  ;;  %793 = vmatprep.subr.bf16.mxu1 %v835_v22 }
  0x1c   :  { %763 = vmatprep.subr.bf16.mxu0 %v820_v11 }
  0x1e   :  { %794 = vmatpush3.bf16.msra.mxu1 %v835_v22 }
  0x1f   :  { %764 = vmatpush3.bf16.msra.mxu0 %v820_v11  ;;  %795 = vmatprep.subr.bf16.mxu1 %v836_v23 }
  0x22   :  { %766 = vmatmul.mubr.bf16.vlgmr.msra.gmra.mrb[0].mxu0 %v822_v14  ;;  %796 = vmatpush3.bf16.msra.mxu1 %v836_v23 }
  0x23   :  { %769 = vmatprep.mubr.bf16.mxu0 %v823_v15 }
  0x2a   :  { %770 = vmatmul.mubr.bf16.gmra.mrb[4].mxu0 %v824_v17 }
  0x2b   :  { %773 = vmatprep.mubr.bf16.mxu0 %v825_v18 }
  0x32   :  { %774 = vmatmul.mubr.bf16.gmra.mrb[8].mxu0 %v826_v19 }
  0x33   :  { %777 = vmatprep.mubr.bf16.mxu0 %v827_v20 }
  0x3a   :  { %778 = vmatmul.mubr.bf16.gmra.mrb[12].mxu0 %v828_v21 }
  0xf5   :  { %v767_v24 = vpop.f32.mrb[0].mxu0 }
  0xf6   :  { %v221_v26 = vpop.f32.mrb[1].mxu0  ;;  %v344_v28 = vadd.f32 %v767_v24, %v629_v25 }
  0xf7   :  { %v768_v27 = vpop.f32.mrb[2].mxu0  ;;  %v342_v31 = vadd.f32 %v629_v25, %v221_v26 }
  0xf8   :  { %v345_v29 = vadd.f32 %v768_v27, %v629_v25  ;;  %v224_v30 = vpop.f32.mrb[3].mxu0 }
  0xf9   :  { %v343_v32 = vadd.f32 %v629_v25, %v224_v30 }
  0xfa   :  { %v359_v33 = vpack.c.bf16 %v345_v29, %v344_v28 }
  0xfb   :  { %v358_v34 = vpack.c.bf16 %v343_v32, %v342_v31 }
  0xfd   :  { %v771_v35 = vpop.f32.mrb[4].mxu0  ;;  %797 = vmatprep.mubr.bf16.mxu1 %v358_v34 }
  0xfe   :  { %v237_v36 = vpop.f32.mrb[5].mxu0  ;;  %798 = vmatmul.mubr.bf16.vlgmr.msra.gmra.mrb[0].mxu1 %v359_v33  ;;  %v348_v38 = vadd.f32 %v771_v35, %v629_v25 }
  0xff   :  { %v772_v37 = vpop.f32.mrb[6].mxu0  ;;  %v346_v41 = vadd.f32 %v629_v25, %v237_v36 }
 0x100   :  { %v349_v39 = vadd.f32 %v772_v37, %v629_v25  ;;  %v240_v40 = vpop.f32.mrb[7].mxu0 }
 0x101   :  { %v347_v42 = vadd.f32 %v629_v25, %v240_v40 }
 0x102   :  { %v361_v43 = vpack.c.bf16 %v349_v39, %v348_v38 }
 0x103   :  { %v360_v44 = vpack.c.bf16 %v347_v42, %v346_v41 }
 0x105   :  { %v775_v45 = vpop.f32.mrb[8].mxu0  ;;  %801 = vmatprep.mubr.bf16.mxu1 %v360_v44 }
 0x106   :  { %v253_v46 = vpop.f32.mrb[9].mxu0  ;;  %802 = vmatmul.mubr.bf16.gmra.mrb[4].mxu1 %v361_v43  ;;  %v352_v48 = vadd.f32 %v775_v45, %v629_v25 }
 0x107   :  { %v776_v47 = vpop.f32.mrb[10].mxu0  ;;  %v350_v51 = vadd.f32 %v629_v25, %v253_v46 }
 0x108   :  { %v353_v49 = vadd.f32 %v776_v47, %v629_v25  ;;  %v256_v50 = vpop.f32.mrb[11].mxu0 }
 0x109   :  { %v351_v52 = vadd.f32 %v629_v25, %v256_v50 }
 0x10a   :  { %v363_v53 = vpack.c.bf16 %v353_v49, %v352_v48 }
 0x10b   :  { %v362_v54 = vpack.c.bf16 %v351_v52, %v350_v51 }
 0x10d   :  { %v779_v55 = vpop.f32.mrb[12].mxu0  ;;  %805 = vmatprep.mubr.bf16.mxu1 %v362_v54 }
 0x10e   :  { %v269_v56 = vpop.f32.mrb[13].mxu0  ;;  %806 = vmatmul.mubr.bf16.gmra.mrb[8].mxu1 %v363_v53  ;;  %v356_v58 = vadd.f32 %v779_v55, %v629_v25 }
 0x10f   :  { %v780_v57 = vpop.f32.mrb[14].mxu0  ;;  %v354_v61 = vadd.f32 %v629_v25, %v269_v56 }
 0x110   :  { %v357_v59 = vadd.f32 %v780_v57, %v629_v25  ;;  %v272_v60 = vpop.f32.mrb[15].mxu0 }
 0x111   :  { %v355_v62 = vadd.f32 %v629_v25, %v272_v60 }
 0x112   :  { %v365_v63 = vpack.c.bf16 %v357_v59, %v356_v58 }
 0x113   :  { %v364_v0 = vpack.c.bf16 %v355_v62, %v354_v61 }
 0x115   :  { %809 = vmatprep.mubr.bf16.mxu1 %v364_v0 }
 0x116   :  { %810 = vmatmul.mubr.bf16.gmra.mrb[12].mxu1 %v365_v63 }
 0x1d1   :  { %v799_v1 = vpop.f32.mrb[0].mxu1 }
 0x1d2   :  { %v464_v2 = vpop.f32.mrb[1].mxu1 }
 0x1d3   :  { %v800_v3 = vpop.f32.mrb[2].mxu1 }
 0x1d4   :  { %v678_v4 = vpack.c.bf16 %v800_v3, %v799_v1  ;;  %v467_v5 = vpop.f32.mrb[3].mxu1 }
 0x1d5   :  { %v673_v6 = vpack.c.bf16 %v467_v5, %v464_v2 }
 0x1d6   :  { %710 = vst [vmem:[%s965_s4 + $0x8] sm:$0xff] %v678_v4  }
 0x1d7   :  { %674 = vst [vmem:[%s965_s4] sm:$0xff] %v673_v6  }
 0x1d9   :  { %v803_v7 = vpop.f32.mrb[4].mxu1 }
 0x1da   :  { %v480_v8 = vpop.f32.mrb[5].mxu1 }
 0x1db   :  { %v804_v9 = vpop.f32.mrb[6].mxu1 }
 0x1dc   :  { %v688_v10 = vpack.c.bf16 %v804_v9, %v803_v7  ;;  %v483_v11 = vpop.f32.mrb[7].mxu1 }
 0x1dd   :  { %v683_v12 = vpack.c.bf16 %v483_v11, %v480_v8 }
 0x1de   :  { %712 = vst [vmem:[%s965_s4 + $0x18] sm:$0xff] %v688_v10  }
 0x1df   :  { %711 = vst [vmem:[%s965_s4 + $0x10] sm:$0xff] %v683_v12  }
 0x1e1   :  { %v807_v13 = vpop.f32.mrb[8].mxu1 }
 0x1e2   :  { %v496_v14 = vpop.f32.mrb[9].mxu1 }
 0x1e3   :  { %v808_v15 = vpop.f32.mrb[10].mxu1 }
 0x1e4   :  { %v698_v16 = vpack.c.bf16 %v808_v15, %v807_v13  ;;  %v499_v17 = vpop.f32.mrb[11].mxu1 }
 0x1e5   :  { %v693_v18 = vpack.c.bf16 %v499_v17, %v496_v14 }
 0x1e6   :  { %714 = vst [vmem:[%s965_s4 + $0x28] sm:$0xff] %v698_v16  }
 0x1e7   :  { %713 = vst [vmem:[%s965_s4 + $0x20] sm:$0xff] %v693_v18  }
 0x1e9   :  { %v811_v19 = vpop.f32.mrb[12].mxu1 }
 0x1ea   :  { %v512_v20 = vpop.f32.mrb[13].mxu1 }
 0x1eb   :  { %v812_v21 = vpop.f32.mrb[14].mxu1 }
 0x1ec   :  { %v708_v22 = vpack.c.bf16 %v812_v21, %v811_v19  ;;  %v515_v23 = vpop.f32.mrb[15].mxu1 }
 0x1ed   :  { %v703_v24 = vpack.c.bf16 %v515_v23, %v512_v20 }
 0x1ee   :  { %716 = vst [vmem:[%s965_s4 + $0x38] sm:$0xff] %v708_v22  }
 0x1ef   :  { %715 = vst [vmem:[%s965_s4 + $0x30] sm:$0xff] %v703_v24  }

</bundles_post_ra>
